<compile_context>
chip_gen: v5e
topology: v5e:2x2
jax: 0.10.0
libtpu: 0.0.40
codegen_flags: <defaults>
</compile_context>

<pallas_src>
import jax
import jax.numpy as jnp
from jax.experimental import pallas as pl
from jax.experimental.pallas import tpu as pltpu  # noqa: F401  (TPU backend)


def _fused_mm_assemble_kernel(x1_ref, x2_ref, out_ref):
    # One MXU matmul (f32 accumulation). v1 and v2 of the reference are
    # identical by construction, so compute the product once.
    v = jnp.dot(x1_ref[...], x2_ref[...], preferred_element_type=jnp.float32)
    # t1 = cat([v1, v2], 1) == [v | v]            -> (M, 2N)
    row = jnp.concatenate([v, v], axis=1)
    # t2 = cat([v1.repeat(2,1), v2.repeat(2,1)], 1) == [[v|v],[v|v]]
    # t3 = cat([t1, t2], 0)                        -> (3M, 2N) == tile(v,(3,2))
    out_ref[...] = jnp.concatenate([row, row, row], axis=0)


def model_forward(x1, x2):
    """Pallas/JAX port of Model.forward (well-defined prefix through t3).

    TODO(synk): the reference's t4 = torch.cat([t1, t2], 1) and the final
    torch.cat([t3, t4], 1) are shape-inconsistent for every input size
    (t1 has M rows, t2 has 2M rows) and raise RuntimeError in PyTorch itself,
    so only the well-defined part of the graph (through t3) is reproduced.
    """
    m, k = x1.shape
    k2, n = x2.shape
    assert k == k2, "inner dims must match"
    out_sd = jax.ShapeDtypeStruct((3 * m, 2 * n), jnp.float32)
    # Tiny matrices: a single grid-less invocation, full-array blocks in VMEM,
    # one matmul and ONE full-block (unmasked) output store.
    return pl.pallas_call(
        _fused_mm_assemble_kernel,
        out_shape=out_sd,
        in_specs=[
            pl.BlockSpec((m, k), lambda: (0, 0)),
            pl.BlockSpec((k, n), lambda: (0, 0)),
        ],
        out_specs=pl.BlockSpec((3 * m, 2 * n), lambda: (0, 0)),
    )(x1, x2)


if __name__ == "__main__":
    key = jax.random.PRNGKey(0)
    k1, k2 = jax.random.split(key)
    x1 = jax.random.normal(k1, (2, 2), dtype=jnp.float32)
    x2 = jax.random.normal(k2, (2, 2), dtype=jnp.float32)

    out = model_forward(x1, x2)
    out = jax.block_until_ready(out)

    # Pure-JAX reference check of the well-defined part of the graph.
    ref_v = x1 @ x2
    ref_t1 = jnp.concatenate([ref_v, ref_v], axis=1)
    ref_rep = jnp.tile(ref_v, (2, 1))
    ref_t2 = jnp.concatenate([ref_rep, ref_rep], axis=1)
    ref_t3 = jnp.concatenate([ref_t1, ref_t2], axis=0)

    assert out.shape == (6, 4), out.shape
    assert out.dtype == jnp.float32
    assert jnp.allclose(out, ref_t3, atol=1e-5, rtol=1e-5)
    print("KERNEL_OK")
</pallas_src>

<mosaic_0001>
module attributes {stable_mosaic.version = 11 : i64} {
  func.func @_fused_mm_assemble_kernel(%arg0: memref<2x2xf32, #tpu.memory_space<vmem>>, %arg1: memref<2x2xf32, #tpu.memory_space<vmem>>, %arg2: memref<6x4xf32, #tpu.memory_space<vmem>>) attributes {dimension_semantics = [], scalar_prefetch = 0 : i64, scratch_operands = 0 : i64, tpu.core_type = #tpu.core_type<tc>} {
    %c0 = arith.constant 0 : index
    %c0_0 = arith.constant 0 : index
    %0 = vector.load %arg0[%c0, %c0_0] : memref<2x2xf32, #tpu.memory_space<vmem>>, vector<2x2xf32>
    %c0_1 = arith.constant 0 : index
    %c0_2 = arith.constant 0 : index
    %1 = vector.load %arg1[%c0_1, %c0_2] : memref<2x2xf32, #tpu.memory_space<vmem>>, vector<2x2xf32>
    %cst = arith.constant dense<0.000000e+00> : vector<2x2xf32>
    %2 = tpu.matmul %0, %1, %cst {dimension_numbers = #tpu.dot_dimension_numbers<[1], [0], [0], [1], [0, 0, 1, 1], [], []>} : vector<2x2xf32>, vector<2x2xf32>, vector<2x2xf32> -> vector<2x2xf32>
    %3 = tpu.concatenate %2, %2 in 1 : vector<2x2xf32>, vector<2x2xf32> -> vector<2x4xf32>
    %4 = tpu.concatenate %3, %3, %3 in 0 : vector<2x4xf32>, vector<2x4xf32>, vector<2x4xf32> -> vector<6x4xf32>
    %c0_3 = arith.constant 0 : index
    %c0_4 = arith.constant 0 : index
    %5 = vector.load %arg2[%c0_3, %c0_4] : memref<6x4xf32, #tpu.memory_space<vmem>>, vector<6x4xf32>
    tpu.vector_store %arg2[%c0_3, %c0_4], %4 {strides = array<i32>} : memref<6x4xf32, #tpu.memory_space<vmem>>, vector<6x4xf32>,
    return
  }
}

</mosaic_0001>

<bundles_post_ra>
// kernel: tpu_custom_call.1
= control target key start
LH: loop header
LB: loop body
LE: loop exit
PB: predicated region body
PF: predicated region fallthrough
CT: control target
= control target key end

     0   :  { %7 = vsyncpa [#allocation3], 0  ;;  %s174_s0 = inlined_call_operand.hbm [shape: f32[2,2], index: 0, kind: input, shape index: {}]   ;;  %s175_s1 = inlined_call_operand.hbm [shape: f32[2,2], index: 1, kind: input, shape index: {}]   ;;  %s176_s2 = inlined_call_operand.vmem [shape: f32[6,4], index: 2, kind: output, shape index: {}]  }
   0x1   :  { %s14_s11 = sshll.u32 %s174_s0, 4  ;;  %s15_s11 = int_to_ptr.hbm [resolvable:$true] %s14_s11 }
   0x2   :  { %8 = vsyncpa [#allocation5], 0  ;;  %s147_s12 = smov [#allocation2]   ;;  %s25_s16 = sshll.u32 %s175_s1, 4  ;;  %s26_s16 = int_to_ptr.hbm [resolvable:$true] %s25_s16 }
   0x3   :  { %s16_s13 = sshll.u32 %s147_s12, 4  ;;  %s148_s17 = smov [#allocation4]   ;;  %s17_s13 = int_to_ptr.vmem [resolvable:$true] %s16_s13 }
   0x4   :  { %19 = dma.hbm_to_vmem [thread:$0]  %s15_s11, 32, %s17_s13, [#allocation3]  }
   0x5   :  { %s27_s18 = sshll.u32 %s148_s17, 4  ;;  %s28_s18 = int_to_ptr.vmem [resolvable:$true] %s27_s18 }
   0x6   :  { %30 = dma.hbm_to_vmem [thread:$0]  %s26_s16, 32, %s28_s18, [#allocation5]  }
   0x7   :  { %143 = dma.done.wait [#allocation3], 32  }
   0x8   :  { %144 = vsyncadd [#allocation3], 4294967264 }
   0x9   :  { %145 = dma.done.wait [#allocation5], 32  }
   0xa   :  { %146 = vsyncadd [#allocation5], 4294967264  ;;  %vm45_vm0 = vcmask 1041408   ;;  %vm41_vm1 = vcmask 15360   ;;  %v40_v0 = vld [vmem:[#allocation4] sm:$0x3] }
   0xb   :  { %v39_v1 = vld [vmem:[#allocation2] sm:$0x3]  ;;  %90 = vmatpush.msk.msra.mxu0 %vm45_vm0, %v40_v0  ;;  %s149_s0 = smov 2   ;;  %vm80_vm2 = vcmask 1043456   ;;  %vm82_vm3 = vcmask 29696  }
   0xc   :  { %91 = vmatmul.msk.f32.vlgmr.msra.gmra.mxu0 %vm41_vm1, %v39_v1 }
  0x89   :  { %v66_v2 = vpop.f32.mrf.mxu0 }
  0x8a   :  { %70 = vrot.lane.b32.xlu0 %v66_v2, %s149_s0 }
  0xfc   :  { %v71_v3 = vpop.permute.xlu0 %70 }
  0xfd   :  { %v73_v4 = vsel %vm41_vm1, %v66_v2, %v71_v3 }
  0xfe   :  { %v75_v5 = vrot.slane %v73_v4, 6  ;;  %v77_v6 = vrot.slane %v73_v4, 4 }
 0x100   :  { %v79_v7 = vsel %vm45_vm0, %v73_v4, %v75_v5 }
 0x101   :  { %v81_v8 = vsel %vm80_vm2, %v79_v7, %v77_v6 }
 0x102   :  { %83 = vst.msk [vmem:[%s176_s2] sm:$0x3f] %vm82_vm3, %v81_v8 }
 0x103   :  { %88 = vsyncpa [#allocation3], 1 }
 0x104   :  { %89 = vsyncpa [#allocation5], 1 }

</bundles_post_ra>
